<compile_context>
chip_gen: v7x
topology: tpu7x:2x2x1
jax: 0.10.0
libtpu: 0.0.40
codegen_flags: <defaults>
</compile_context>

<pallas_src>
import math

import jax
import jax.numpy as jnp
from jax.experimental import pallas as pl
from jax.experimental.pallas import tpu as pltpu


# ----------------------------------------------------------------------------
# Fused attention kernel: one batch element per grid step, everything resident.
# ----------------------------------------------------------------------------
def _make_sdpa_kernel(temperature, has_mask):
    temperature = float(temperature)

    def kernel(*refs):
        if has_mask:
            q_ref, k_ref, v_ref, dm_ref, m_ref, out_ref, attn_ref = refs
        else:
            q_ref, k_ref, v_ref, dm_ref, out_ref, attn_ref = refs
            m_ref = None

        q = q_ref[0]          # (Lq, D)
        k = k_ref[0]          # (Lk, D)
        v = v_ref[0]          # (Lk, Dv)
        dm = dm_ref[0]        # (Lq, Lk) float: 1 keep, 0 drop

        # scores = (q @ k^T) / temperature  (contract feature dims on the MXU)
        s = jax.lax.dot_general(q, k, (((1,), (1,)), ((), ())),
                                preferred_element_type=jnp.float32)
        s = s / temperature

        if has_mask:
            # torch: attn.masked_fill(mask, -inf)
            s = jnp.where(m_ref[0] > 0.0, -jnp.inf, s)

        # memory-efficient masked softmax: fill (1 - diag_mask) with -1e32
        s = jnp.where(dm > 0.0, s, jnp.float32(-1e32))
        row_max = jnp.max(s, axis=-1, keepdims=True)
        e = jnp.exp(s - row_max)
        denom = jnp.sum(e, axis=-1, keepdims=True)
        p = e / denom

        attn_ref[0] = p.astype(attn_ref.dtype)
        out_ref[0] = jnp.dot(p.astype(v.dtype), v,
                             preferred_element_type=jnp.float32
                             ).astype(out_ref.dtype)

    return kernel


def scaled_dot_product_attention(q, k, v, diag_mask, temperature, mask=None):
    """q: (B, Lq, D), k: (B, Lk, D), v: (B, Lk, Dv), diag_mask: (B, Lk) or
    (B, Lq, Lk).  Returns (output (B, Lq, Dv), attn (B, Lq, Lk))."""
    B, Lq, D = q.shape
    _, Lk, _ = k.shape
    Dv = v.shape[-1]

    # torch: while mask.dim() < vector.dim(): mask = mask.unsqueeze(1)
    dm = diag_mask.astype(jnp.float32)
    if dm.ndim == 2:
        dm = jnp.broadcast_to(dm[:, None, :], (B, Lq, Lk))

    has_mask = mask is not None
    inputs = [q, k, v, dm]
    in_specs = [
        pl.BlockSpec((1, Lq, D), lambda b: (b, 0, 0)),
        pl.BlockSpec((1, Lk, D), lambda b: (b, 0, 0)),
        pl.BlockSpec((1, Lk, Dv), lambda b: (b, 0, 0)),
        pl.BlockSpec((1, Lq, Lk), lambda b: (b, 0, 0)),
    ]
    if has_mask:
        inputs.append(mask.astype(jnp.float32))
        in_specs.append(pl.BlockSpec((1, Lq, Lk), lambda b: (b, 0, 0)))

    out, attn = pl.pallas_call(
        _make_sdpa_kernel(temperature, has_mask),
        out_shape=(jax.ShapeDtypeStruct((B, Lq, Dv), q.dtype),
                   jax.ShapeDtypeStruct((B, Lq, Lk), jnp.float32)),
        grid_spec=pltpu.PrefetchScalarGridSpec(
            num_scalar_prefetch=0,
            grid=(B,),
            in_specs=in_specs,
            out_specs=[
                pl.BlockSpec((1, Lq, Dv), lambda b: (b, 0, 0)),
                pl.BlockSpec((1, Lq, Lk), lambda b: (b, 0, 0)),
            ]),
        compiler_params=pltpu.CompilerParams(
            dimension_semantics=("parallel",)),
    )(*inputs)
    return out, attn


# ----------------------------------------------------------------------------
# Pure-JAX reference (mirrors the PyTorch module)
# ----------------------------------------------------------------------------
def _reference(q, k, v, diag_mask, temperature, mask=None):
    attn = jnp.einsum("bqd,bkd->bqk", q, k) / temperature
    if mask is not None:
        attn = jnp.where(mask, -jnp.inf, attn)
    dm = diag_mask.astype(jnp.float32)
    while dm.ndim < attn.ndim:
        dm = dm[:, None]
    masked = jnp.where(dm > 0.0, attn, -1e32)
    p = jax.nn.softmax(masked, axis=-1)
    out = jnp.einsum("bqk,bkd->bqd", p, v)
    return out, p


# ----------------------------------------------------------------------------
if __name__ == "__main__":
    B, L, D = 2, 128, 128          # lane-dense: attn (L, L) and output (L, D)
    temperature = math.sqrt(D)

    key = jax.random.PRNGKey(0)
    kq, kk, kv = jax.random.split(key, 3)
    q = jax.random.normal(kq, (B, L, D), jnp.float32)
    k = jax.random.normal(kk, (B, L, D), jnp.float32)
    v = jax.random.normal(kv, (B, L, D), jnp.float32)

    # diag_mask: keep everything except the diagonal (typical usage)
    diag_mask = jnp.broadcast_to(1.0 - jnp.eye(L, dtype=jnp.float32), (B, L, L))

    # --- case 1: mask=None (module default) ---
    out, attn = scaled_dot_product_attention(q, k, v, diag_mask, temperature)
    out = jax.block_until_ready(out)
    attn = jax.block_until_ready(attn)
    ref_out, ref_attn = _reference(q, k, v, diag_mask, temperature)
    assert out.shape == (B, L, D) and attn.shape == (B, L, L)
    assert jnp.allclose(out, ref_out, atol=1e-4, rtol=1e-4), "output mismatch"
    assert jnp.allclose(attn, ref_attn, atol=1e-4, rtol=1e-4), "attn mismatch"

    # --- case 2: explicit boolean mask (mask last 16 key positions) ---
    mask = jnp.broadcast_to(jnp.arange(L) >= (L - 16), (B, L, L))
    out_m, attn_m = scaled_dot_product_attention(q, k, v, diag_mask,
                                                 temperature, mask=mask)
    out_m = jax.block_until_ready(out_m)
    ref_out_m, ref_attn_m = _reference(q, k, v, diag_mask, temperature, mask)
    assert jnp.allclose(out_m, ref_out_m, atol=1e-4, rtol=1e-4), "masked out mismatch"
    assert jnp.allclose(attn_m, ref_attn_m, atol=1e-4, rtol=1e-4), "masked attn mismatch"

    print("KERNEL_OK")
</pallas_src>

<mosaic_0001>
module attributes {stable_mosaic.version = 11 : i64} {
  func.func @kernel(%arg0: i32, %arg1: memref<1x128x128xf32, #tpu.memory_space<vmem>>, %arg2: memref<1x128x128xf32, #tpu.memory_space<vmem>>, %arg3: memref<1x128x128xf32, #tpu.memory_space<vmem>>, %arg4: memref<1x128x128xf32, #tpu.memory_space<vmem>>, %arg5: memref<1x128x128xf32, #tpu.memory_space<vmem>>, %arg6: memref<1x128x128xf32, #tpu.memory_space<vmem>>) attributes {dimension_semantics = [#tpu.dimension_semantics<parallel>], iteration_bounds = array<i64: 2>, scalar_prefetch = 0 : i64, scratch_operands = 0 : i64, tpu.core_type = #tpu.core_type<tc>, window_params = [{transform_indices = @transform_0, window_bounds = array<i64: 1, 128, 128>}, {transform_indices = @transform_1, window_bounds = array<i64: 1, 128, 128>}, {transform_indices = @transform_2, window_bounds = array<i64: 1, 128, 128>}, {transform_indices = @transform_3, window_bounds = array<i64: 1, 128, 128>}, {transform_indices = @transform_4, window_bounds = array<i64: 1, 128, 128>}, {transform_indices = @transform_5, window_bounds = array<i64: 1, 128, 128>}]} {
    %c0 = arith.constant 0 : index
    %c0_0 = arith.constant 0 : index
    %c0_1 = arith.constant 0 : index
    %0 = vector.load %arg1[%c0, %c0_0, %c0_1] : memref<1x128x128xf32, #tpu.memory_space<vmem>>, vector<1x128x128xf32>
    %1 = vector.shape_cast %0 : vector<1x128x128xf32> to vector<128x128xf32>
    %c0_2 = arith.constant 0 : index
    %c0_3 = arith.constant 0 : index
    %c0_4 = arith.constant 0 : index
    %2 = vector.load %arg2[%c0_2, %c0_3, %c0_4] : memref<1x128x128xf32, #tpu.memory_space<vmem>>, vector<1x128x128xf32>
    %3 = vector.shape_cast %2 : vector<1x128x128xf32> to vector<128x128xf32>
    %c0_5 = arith.constant 0 : index
    %c0_6 = arith.constant 0 : index
    %c0_7 = arith.constant 0 : index
    %4 = vector.load %arg3[%c0_5, %c0_6, %c0_7] : memref<1x128x128xf32, #tpu.memory_space<vmem>>, vector<1x128x128xf32>
    %5 = vector.shape_cast %4 : vector<1x128x128xf32> to vector<128x128xf32>
    %c0_8 = arith.constant 0 : index
    %c0_9 = arith.constant 0 : index
    %c0_10 = arith.constant 0 : index
    %6 = vector.load %arg4[%c0_8, %c0_9, %c0_10] : memref<1x128x128xf32, #tpu.memory_space<vmem>>, vector<1x128x128xf32>
    %7 = vector.shape_cast %6 : vector<1x128x128xf32> to vector<128x128xf32>
    %cst = arith.constant dense<0.000000e+00> : vector<128x128xf32>
    %8 = tpu.matmul %1, %3, %cst {dimension_numbers = #tpu.dot_dimension_numbers<[1], [1], [0], [0], [0, 0, 1, 0], [], []>} : vector<128x128xf32>, vector<128x128xf32>, vector<128x128xf32> -> vector<128x128xf32>
    %cst_11 = arith.constant 11.3137083 : f32
    %9 = vector.broadcast %cst_11 : f32 to vector<128x128xf32>
    %10 = arith.divf %8, %9 : vector<128x128xf32>
    %cst_12 = arith.constant 0.000000e+00 : f32
    %11 = vector.broadcast %cst_12 : f32 to vector<128x128xf32>
    %12 = arith.cmpf ogt, %7, %11 : vector<128x128xf32>
    %cst_13 = arith.constant -1.000000e+32 : f32
    %13 = vector.broadcast %cst_13 : f32 to vector<128x128xf32>
    %14 = arith.select %12, %10, %13 : vector<128x128xi1>, vector<128x128xf32>
    %cst_14 = arith.constant dense<0xFF800000> : vector<128xf32>
    %15 = vector.multi_reduction <maximumf>, %14, %cst_14 [1] : vector<128x128xf32> to vector<128xf32>
    %16 = vector.shape_cast %15 : vector<128xf32> to vector<128x1xf32>
    %17 = vector.broadcast %16 : vector<128x1xf32> to vector<128x128xf32>
    %18 = arith.subf %14, %17 : vector<128x128xf32>
    %19 = math.exp %18 : vector<128x128xf32>
    %cst_15 = arith.constant dense<0.000000e+00> : vector<128xf32>
    %20 = vector.multi_reduction <add>, %19, %cst_15 [1] : vector<128x128xf32> to vector<128xf32>
    %21 = vector.shape_cast %20 : vector<128xf32> to vector<128x1xf32>
    %22 = vector.broadcast %21 : vector<128x1xf32> to vector<128x128xf32>
    %23 = arith.divf %19, %22 : vector<128x128xf32>
    %c0_16 = arith.constant 0 : index
    %c0_17 = arith.constant 0 : index
    %c0_18 = arith.constant 0 : index
    %24 = vector.load %arg6[%c0_16, %c0_17, %c0_18] : memref<1x128x128xf32, #tpu.memory_space<vmem>>, vector<1x128x128xf32>
    %25 = vector.shape_cast %24 : vector<1x128x128xf32> to vector<128x128xf32>
    %26 = vector.shape_cast %23 : vector<128x128xf32> to vector<1x128x128xf32>
    tpu.vector_store %arg6[%c0_16, %c0_17, %c0_18], %26 {strides = array<i32>} : memref<1x128x128xf32, #tpu.memory_space<vmem>>, vector<1x128x128xf32>,
    %cst_19 = arith.constant dense<0.000000e+00> : vector<128x128xf32>
    %27 = tpu.matmul %23, %5, %cst_19 {dimension_numbers = #tpu.dot_dimension_numbers<[1], [0], [0], [1], [0, 0, 1, 1], [], []>} : vector<128x128xf32>, vector<128x128xf32>, vector<128x128xf32> -> vector<128x128xf32>
    %c0_20 = arith.constant 0 : index
    %c0_21 = arith.constant 0 : index
    %c0_22 = arith.constant 0 : index
    %28 = vector.load %arg5[%c0_20, %c0_21, %c0_22] : memref<1x128x128xf32, #tpu.memory_space<vmem>>, vector<1x128x128xf32>
    %29 = vector.shape_cast %28 : vector<1x128x128xf32> to vector<128x128xf32>
    %30 = vector.shape_cast %27 : vector<128x128xf32> to vector<1x128x128xf32>
    tpu.vector_store %arg5[%c0_20, %c0_21, %c0_22], %30 {strides = array<i32>} : memref<1x128x128xf32, #tpu.memory_space<vmem>>, vector<1x128x128xf32>,
    return
  }
  func.func @transform_0(%arg0: i32) -> (i32, i32, i32) {
    %c0_i32 = arith.constant 0 : i32
    %c0_i32_0 = arith.constant 0 : i32
    %c0_i32_1 = arith.constant 0 : i32
    return %arg0, %c0_i32, %c0_i32_0 : i32, i32, i32
  }
  func.func @transform_1(%arg0: i32) -> (i32, i32, i32) {
    %c0_i32 = arith.constant 0 : i32
    %c0_i32_0 = arith.constant 0 : i32
    %c0_i32_1 = arith.constant 0 : i32
    return %arg0, %c0_i32, %c0_i32_0 : i32, i32, i32
  }
  func.func @transform_2(%arg0: i32) -> (i32, i32, i32) {
    %c0_i32 = arith.constant 0 : i32
    %c0_i32_0 = arith.constant 0 : i32
    %c0_i32_1 = arith.constant 0 : i32
    return %arg0, %c0_i32, %c0_i32_0 : i32, i32, i32
  }
  func.func @transform_3(%arg0: i32) -> (i32, i32, i32) {
    %c0_i32 = arith.constant 0 : i32
    %c0_i32_0 = arith.constant 0 : i32
    %c0_i32_1 = arith.constant 0 : i32
    return %arg0, %c0_i32, %c0_i32_0 : i32, i32, i32
  }
  func.func @transform_4(%arg0: i32) -> (i32, i32, i32) {
    %c0_i32 = arith.constant 0 : i32
    %c0_i32_0 = arith.constant 0 : i32
    %c0_i32_1 = arith.constant 0 : i32
    return %arg0, %c0_i32, %c0_i32_0 : i32, i32, i32
  }
  func.func @transform_5(%arg0: i32) -> (i32, i32, i32) {
    %c0_i32 = arith.constant 0 : i32
    %c0_i32_0 = arith.constant 0 : i32
    %c0_i32_1 = arith.constant 0 : i32
    return %arg0, %c0_i32, %c0_i32_0 : i32, i32, i32
  }
}

</mosaic_0001>

<bundles_post_ra>
// kernel: tpu_custom_call.1
= control target key start
LH: loop header
LB: loop body
LE: loop exit
PB: predicated region body
PF: predicated region fallthrough
CT: control target
= control target key end

     0   :  { %s2416_s0 = inlined_call_operand.hbm [shape: f32[2,128,128], index: 0, kind: input, shape index: {}]   ;;  %s2417_s1 = inlined_call_operand.hbm [shape: f32[2,128,128], index: 1, kind: input, shape index: {}]   ;;  %s2418_s2 = inlined_call_operand.hbm [shape: f32[2,128,128], index: 2, kind: input, shape index: {}]   ;;  %s2419_s3 = inlined_call_operand.hbm [shape: f32[2,128,128], index: 3, kind: input, shape index: {}]   ;;  %s2420_s4 = inlined_call_operand.hbm [shape: f32[2,128,128], index: 4, kind: output, shape index: {0}]   ;;  %s2421_s5 = inlined_call_operand.hbm [shape: f32[2,128,128], index: 5, kind: output, shape index: {1}]  }
   0x1   :  { %2429 = sst [smem:[#allocation20_spill]] %s2416_s0 }
   0x2   :  { %2430 = sst [smem:[#allocation21_spill]] %s2417_s1 }
   0x3   :  { %11 = vsyncpa [#allocation3], 0 }
   0x4   :  { %13 = vsyncpa [#allocation3 + $0x1], 0 }
   0x5   :  { %14 = vsyncpa [#allocation6], 0 }
   0x6   :  { %16 = vsyncpa [#allocation6 + $0x1], 0 }
   0x7   :  { %17 = vsyncpa [#allocation9], 0 }
   0x8   :  { %19 = vsyncpa [#allocation9 + $0x1], 0 }
   0x9   :  { %20 = vsyncpa [#allocation4], 0 }
   0xa   :  { %22 = vsyncpa [#allocation4 + $0x1], 0 }
   0xb   :  { %23 = vsyncpa [#allocation12], 0 }
   0xc   :  { %25 = vsyncpa [#allocation12 + $0x1], 0  ;;  %s1834_s18 = smov 0   ;;  %s1836_s19 = smov 0  }
   0xd   :  { %s1838_s20 = smov 0   ;;  %s1840_s21 = smov 0  }
   0xe LB: > { %2431 = sst [smem:[#allocation18_spill]] %s1788_s20  ;;  %s1855_s22 = sadd.s32 4294967295, %s1792_s21   ;;  %s1792_s21 = sphi %s1840_s21, %s2453_s21   ;;  %s1788_s20 = sphi %s1838_s20, %s2450_s20   ;;  %s1784_s19 = sphi %s1836_s19, %s2452_s19   ;;  %s1780_s18 = sphi %s1834_s18, %s2451_s18  }
   0xf   : > { %s1156_s23 = sadd.s32 4294967294, %s1792_s21   ;;  %s1859_s24 = sadd.s32 1, %s1792_s21  }
  0x10   : > { %s38_s25 = sadd.s32 1, %s1788_s20  ;;  %s35_s26 = ssub.s32 %s1792_s21, %s1859_s24 }
  0x11   : > { %p45_p0 = scmp.ne.s32.totalorder %s1788_s20, %s1784_s19  ;;  %p36_p1 = scmp.eq.s32.totalorder %s35_s26, 0 }
  0x12   : > { %p46_p2 = scmp.eq.s32.totalorder %s1792_s21, 0  ;;  %p51_p3 = scmp.ne.s32.totalorder %s1784_s19, %s1780_s18 }
  0x13   : > { %p52_p4 = scmp.eq.s32.totalorder %s1855_s22, 0  ;;  %p153_p7 = scmp.eq.s32.totalorder %s1855_s22, 1 }
  0x14   : > { %s1871_s27 = scalar_select %p36_p1, %s1788_s20, %s38_s25  }
  0x15   : > { %p47_p5 = por %p46_p2, %p45_p0  ;;  %p1873_p6 = por %p52_p4, %p51_p3 }
  0x16   : > { %2432 = sst [smem:[#allocation19_spill]] %s1871_s27  ;;  %p159_p8 = scmp.eq.s32.totalorder %s1156_s23, 1 }
  0x17   : > { %s2433_s28 = scalar_select %p1873_p6, 1, 0 }
  0x18   : > { %p1464_p10 = scmp.lt.s32.totalorder %s1792_s21, 2  ;;  %p1880_p11 = por %p153_p7, %p45_p0 }
  0x19   : > { %p1884_p12 = por %p159_p8, %p51_p3  ;;  %s1889_s6 = sand.u32 1, %s1788_s20  }
  0x1a   : > { %s2434_s29 = scalar_select %p1880_p11, 1, 0 }
  0x1b   : > { %s2435_s30 = scalar_select %p1884_p12, 1, 0 }
  0x1c   : > { %s1892_s7 = sshll.u32 %s1792_s21, 11  ;;  %s1895_s8 = sshll.u32 %s1889_s6, 7 }
  0x1d   : > { %p1897_p13 = pnand %p1464_p10, %p47_p5  ;;  %s226_s10 = sand.u32 1, %s1792_s21  }
  0x1e   : > { %s2437_s1 = sld [smem:[#allocation21_spill]]  ;;  %s230_s14 = scalar_lea.vmem [#allocation5], %s1895_s8 }
  0x1f   : > { %s237_s15 = sshll.u32 %s230_s14, 4  ;;  %s1912_s16 = scalar_lea.sflag [#allocation6], %s226_s10  ;;  %s1909_s15 = int_to_ptr.vmem [resolvable:$true] %s237_s15 }
  0x20   : > { %p1918_p2 = pneg %p1897_p13 }
  0x24   : > { %s1906_s13 = scalar_lea.hbm %s2437_s1, %s1892_s7  ;;  %s1571_s11 = scalar_lea.hbm %s2437_s1, 4096 }
  0x25   : > { %s1566_s17 = scalar_lea.hbm %s1906_s13, 2048  ;;  %p1572_p5 = scmp.lt.u32.totalorder %s1906_s13, %s2437_s1 }
  0x26   : > { %p1567_p1 = scmp.ne.s32.totalorder %s1906_s13, %s1566_s17  ;;  %p1573_p7 = scmp.lt.u32.totalorder %s1571_s11, %s1566_s17 }
  0x27   : > { %p1575_p10 = scmp.lt.u32.totalorder %s1566_s17, %s1906_s13 }
  0x28   : > { %p1569_p3 = pnand %p1918_p2, %p1567_p1  ;;  %p1574_p8 = por %p1573_p7, %p1572_p5 }
  0x2a   : > { %p1570_p4 = pneg %p1569_p3  ;;  %p1576_p9 = por %p1575_p10, %p1574_p8 }
  0x2c   : > { %p1577_p0 = pnand %p1576_p9, %p1570_p4 }
  0x2e   : > { %1580 = shalt.err (!%p1577_p0)
}
  0x2f   : > { %s1581_s10 = scalar_lea.vmem %s1909_s15, 2048  ;;  %s1794_s25 = smov [#allocation5]  }
  0x30   : > { %p1582_p1 = scmp.ne.s32.totalorder %s1909_s15, %s1581_s10  ;;  %s1586_s26 = sshll.u32 %s1794_s25, 4  ;;  %s1587_s26 = int_to_ptr.vmem [resolvable:$false] %s1586_s26 }
  0x31   : > { %s1588_s12 = scalar_lea.vmem %s1587_s26, 4096  ;;  %p1589_p11 = scmp.lt.s32.totalorder %s1909_s15, %s1587_s26 }
  0x32   : > { %p1584_p3 = pnand %p1582_p1, %p1918_p2  ;;  %p1590_p6 = scmp.lt.s32.totalorder %s1588_s12, %s1581_s10 }
  0x34   : > { %p1585_p12 = pneg %p1584_p3  ;;  %p1591_p5 = por %p1590_p6, %p1589_p11 }
  0x36   : > { %p1592_p7 = pnand %p1591_p5, %p1585_p12 }
  0x38   : > { %1595 = shalt.err (!%p1592_p7)
}
  0x39   : > { %s2424_s17 = smov 128   ;;  %s2426_s11 = smov 8  }
  0x3a   : > { %1450 = dma.hbm_to_vmem [thread:$0]  (!%p1897_p13), %s1906_s13, 2048, %s1909_s15, %s1912_s16, %s2424_s17, %s2424_s17, %s2426_s11  }
  0x3b   : > { %p287_p6 = scmp.lt.s32.totalorder %s1792_s21, 3  ;;  %s2439_s0 = sld [smem:[#allocation20_spill]] }
  0x3c   : > { %p2440_p9 = scmp.ge.s32.totalorder %s1792_s21, 1  ;;  %s209_s12 = scalar_lea.vmem [#allocation2], %s1895_s8 }
  0x3d   : > { %s216_s1 = sshll.u32 %s209_s12, 4  ;;  %s206_s13 = scalar_lea.sflag [#allocation3], %s1889_s6  ;;  %s1959_s1 = int_to_ptr.vmem [resolvable:$true] %s216_s1 }
  0x3e   : > { %p1954_p11 = pnand %p2440_p9, %p287_p6 }
  0x40   : > { %s2441_s26 = scalar_select %p1954_p11, 1, 0 }
  0x41   : > { %s1950_s25 = scalar_lea.hbm %s2439_s0, %s1892_s7  ;;  %s1601_s17 = scalar_lea.hbm %s2439_s0, 4096 }
  0x42   : > { %s1596_s15 = scalar_lea.hbm %s1950_s25, 2048  ;;  %p1602_p8 = scmp.lt.u32.totalorder %s1950_s25, %s2439_s0 }
  0x43   : > { %p1597_p12 = scmp.ne.s32.totalorder %s1950_s25, %s1596_s15  ;;  %p1603_p10 = scmp.lt.u32.totalorder %s1601_s17, %s1596_s15 }
  0x44   : > { %p1605_p3 = scmp.lt.u32.totalorder %s1596_s15, %s1950_s25 }
  0x45   : > { %p1599_p0 = pnand %p1597_p12, %p1918_p2  ;;  %p1604_p1 = por %p1603_p10, %p1602_p8 }
  0x47   : > { %p1600_p4 = pneg %p1599_p0  ;;  %p1606_p5 = por %p1605_p3, %p1604_p1 }
  0x49   : > { %p1607_p7 = pnand %p1606_p5, %p1600_p4 }
  0x4b   : > { %1610 = shalt.err (!%p1607_p7)
}
  0x4c   : > { %s1611_s12 = scalar_lea.vmem %s1959_s1, 2048  ;;  %s1797_s14 = smov [#allocation2]  }
  0x4d   : > { %p1612_p6 = scmp.ne.s32.totalorder %s1959_s1, %s1611_s12  ;;  %s1616_s10 = sshll.u32 %s1797_s14, 4  ;;  %s1617_s10 = int_to_ptr.vmem [resolvable:$false] %s1616_s10 }
  0x4e   : > { %s1618_s27 = scalar_lea.vmem %s1617_s10, 4096  ;;  %p1619_p0 = scmp.lt.s32.totalorder %s1959_s1, %s1617_s10 }
  0x4f   : > { %p1614_p9 = pnand %p1612_p6, %p1918_p2  ;;  %p1620_p11 = scmp.lt.s32.totalorder %s1618_s27, %s1611_s12 }
  0x51   : > { %p1615_p12 = pneg %p1614_p9  ;;  %p1621_p8 = por %p1620_p11, %p1619_p0 }
  0x53   : > { %p1622_p10 = pnand %p1621_p8, %p1615_p12 }
  0x55   : > { %1625 = shalt.err (!%p1622_p10)
}
  0x56   : > { %s2442_s17 = smov 8   ;;  %s2443_s11 = smov 128  }
  0x57   : > { %1447 = dma.hbm_to_vmem [thread:$0]  (!%p1897_p13), %s1950_s25, 2048, %s1959_s1, %s206_s13, %s2443_s11, %s2443_s11, %s2442_s17  }
  0x58   : > { %s1992_s12 = scalar_lea.hbm %s2418_s2, %s1892_s7  ;;  %s251_s10 = scalar_lea.vmem [#allocation7], %s1895_s8 }
  0x59   : > { %s258_s27 = sshll.u32 %s251_s10, 4  ;;  %s1626_s0 = scalar_lea.hbm %s1992_s12, 2048  ;;  %s1995_s27 = int_to_ptr.vmem [resolvable:$true] %s258_s27 }
  0x5a   : > { %p1627_p11 = scmp.ne.s32.totalorder %s1992_s12, %s1626_s0  ;;  %s1631_s25 = scalar_lea.hbm %s2418_s2, 4096 }
  0x5b   : > { %p1632_p3 = scmp.lt.u32.totalorder %s1992_s12, %s2418_s2  ;;  %p1633_p5 = scmp.lt.u32.totalorder %s1631_s25, %s1626_s0 }
  0x5c   : > { %p1629_p4 = pnand %p1627_p11, %p1918_p2  ;;  %p1635_p6 = scmp.lt.u32.totalorder %s1626_s0, %s1992_s12 }
  0x5d   : > { %p1634_p7 = por %p1633_p5, %p1632_p3 }
  0x5e   : > { %p1630_p1 = pneg %p1629_p4 }
  0x5f   : > { %p1636_p9 = por %p1635_p6, %p1634_p7 }
  0x61   : > { %p1637_p12 = pnand %p1636_p9, %p1630_p1 }
  0x63   : > { %1640 = shalt.err (!%p1637_p12)
}
  0x64   : > { %s1641_s14 = scalar_lea.vmem %s1995_s27, 2048  ;;  %s1798_s20 = smov [#allocation7]  }
  0x65   : > { %p1642_p0 = scmp.ne.s32.totalorder %s1995_s27, %s1641_s14  ;;  %s1646_s10 = sshll.u32 %s1798_s20, 4  ;;  %s1647_s10 = int_to_ptr.vmem [resolvable:$false] %s1646_s10 }
  0x66   : > { %s1648_s1 = scalar_lea.vmem %s1647_s10, 4096  ;;  %p1649_p11 = scmp.lt.s32.totalorder %s1995_s27, %s1647_s10 }
  0x67   : > { %p1644_p8 = pnand %p1642_p0, %p1918_p2  ;;  %p1650_p4 = scmp.lt.s32.totalorder %s1648_s1, %s1641_s14 }
  0x69   : > { %p1645_p10 = pneg %p1644_p8  ;;  %p1651_p3 = por %p1650_p4, %p1649_p11 }
  0x6b   : > { %p1652_p5 = pnand %p1651_p3, %p1645_p10 }
  0x6d   : > { %1655 = shalt.err (!%p1652_p5)
}
  0x6e   : > { %1453 = dma.hbm_to_vmem [thread:$0]  (!%p1897_p13), %s1992_s12, 2048, %s1995_s27, %s1912_s16, %s2443_s11, %s2443_s11, %s2442_s17  }
  0x6f   : > { %s2026_s13 = scalar_lea.hbm %s2419_s3, %s1892_s7  ;;  %s272_s15 = scalar_lea.vmem [#allocation8], %s1895_s8 }
  0x70   : > { %s279_s14 = sshll.u32 %s272_s15, 4  ;;  %s269_s20 = scalar_lea.sflag [#allocation9], %s1889_s6  ;;  %s2029_s14 = int_to_ptr.vmem [resolvable:$true] %s279_s14 }
  0x71   : > { %s1656_s10 = scalar_lea.hbm %s2026_s13, 2048  ;;  %s1661_s27 = scalar_lea.hbm %s2419_s3, 4096 }
  0x72   : > { %p1657_p1 = scmp.ne.s32.totalorder %s2026_s13, %s1656_s10  ;;  %p1662_p9 = scmp.lt.u32.totalorder %s2026_s13, %s2419_s3 }
  0x73   : > { %p1663_p12 = scmp.lt.u32.totalorder %s1661_s27, %s1656_s10  ;;  %p1665_p8 = scmp.lt.u32.totalorder %s1656_s10, %s2026_s13 }
  0x74   : > { %p1659_p7 = pnand %p1657_p1, %p1918_p2 }
  0x75   : > { %p1664_p0 = por %p1663_p12, %p1662_p9 }
  0x76   : > { %p1660_p6 = pneg %p1659_p7 }
  0x77   : > { %p1666_p10 = por %p1665_p8, %p1664_p0 }
  0x79   : > { %p1667_p11 = pnand %p1666_p10, %p1660_p6 }
  0x7b   : > { %1670 = shalt.err (!%p1667_p11)
}
  0x7c   : > { %s1671_s8 = scalar_lea.vmem %s2029_s14, 2048  ;;  %s1799_s0 = smov [#allocation8]  }
  0x7d   : > { %p1672_p4 = scmp.ne.s32.totalorder %s2029_s14, %s1671_s8  ;;  %s1676_s25 = sshll.u32 %s1799_s0, 4  ;;  %s1677_s25 = int_to_ptr.vmem [resolvable:$false] %s1676_s25 }
  0x7e   : > { %s1678_s15 = scalar_lea.vmem %s1677_s25, 4096  ;;  %p1679_p1 = scmp.lt.s32.totalorder %s2029_s14, %s1677_s25 }
  0x7f   : > { %p1674_p3 = pnand %p1672_p4, %p1918_p2  ;;  %p1680_p7 = scmp.lt.s32.totalorder %s1678_s15, %s1671_s8 }
  0x81   : > { %p1675_p5 = pneg %p1674_p3  ;;  %p1681_p9 = por %p1680_p7, %p1679_p1 }
  0x83   : > { %p1682_p12 = pnand %p1681_p9, %p1675_p5 }
  0x85   : > { %1685 = shalt.err (!%p1682_p12)
}
  0x86   : > { %1456 = dma.hbm_to_vmem [thread:$0]  (!%p1897_p13), %s2026_s13, 2048, %s2029_s14, %s269_s20, %s2443_s11, %s2443_s11, %s2442_s17  }
  0x87   : > { %p2444_p2 = scmp.ne.s32.totalorder %s2441_s26, 0 }
  0x88   : > { %s2061_s23 = sand.u32 (!%p2444_p2), 1, %s1784_s19   ;;  %p2445_p6 = scmp.ne.s32.totalorder (!%p2444_p2), %s2433_s28, 0 }
  0x89   : > { %291 = sbr.rel (%p2444_p2) target bundleno = 1005 (0x3ed), region = 36  ;;  %s2064_s10 = sshll.u32 (!%p2444_p2), %s2061_s23, 7 }
  0x8a   : > { %s294_s9 = scalar_lea.sflag (!%p2444_p2), [#allocation3], %s2061_s23  ;;  %s2068_s16 = scalar_lea.vmem (!%p2444_p2), [#allocation2], %s2064_s10 }
  0x90   : > { %1759 = dma.done.wait (%p2445_p6), %s294_s9, 2048  }
  0x91   : > { %1761 = vsyncadd (%p2445_p6), %s294_s9, 4294965248  ;;  %s302_s6 = sand.u32 1, %s1855_s22   ;;  %s2076_s17 = scalar_lea.vmem [#allocation5], %s2064_s10 }
  0x92   : > { %s303_s26 = scalar_lea.sflag [#allocation6], %s302_s6 }
  0x93   : > { %1763 = dma.done.wait (%p2445_p6), %s303_s26, 4096  }
  0x94   : > { %1765 = vsyncadd (%p2445_p6), %s303_s26, 4294963200  ;;  %s2083_s11 = scalar_lea.vmem [#allocation7], %s2064_s10  ;;  %s321_s13 = scalar_lea.sflag [#allocation9], %s2061_s23 }
  0x95   : > { %s2087_s14 = scalar_lea.vmem [#allocation8], %s2064_s10 }
  0x96   : > { %1767 = dma.done.wait (%p2445_p6), %s321_s13, 2048  }
  0x97   : > { %1769 = vsyncadd (%p2445_p6), %s321_s13, 4294965248  ;;  %v387_v0 = vld [vmem:[%s2076_s17] sm:$0xff]  ;;  %v388_v1 = vld [vmem:[%s2076_s17 + $0x8] sm:$0xff]  ;;  %s2271_s28 = scalar_lea.vmem [#allocation11], %s2064_s10  ;;  %s1190_s20 = sshll.u32 %s1855_s22, 11 }
  0x98   : > { %v389_v2 = vld [vmem:[%s2076_s17 + $0x10] sm:$0xff]  ;;  %v1368_v3 = vpack.c.bf16 %v388_v1, %v387_v0  ;;  %v390_v4 = vld [vmem:[%s2076_s17 + $0x18] sm:$0xff]  ;;  %v371_v6 = vld [vmem:[%s2068_s16] sm:$0xff]  ;;  %s2310_s7 = scalar_lea.hbm %s2421_s5, %s1190_s20  ;;  %s985_s1 = sshll.u32 %s2271_s28, 4  ;;  %s2313_s1 = int_to_ptr.vmem [resolvable:$true] %s985_s1 }
  0x99   : > { %v1372_v5 = vpack.c.bf16 %v390_v4, %v389_v2  ;;  %v391_v7 = vld [vmem:[%s2076_s17 + $0x20] sm:$0xff]  ;;  %v392_v8 = vld [vmem:[%s2076_s17 + $0x28] sm:$0xff]  ;;  %1288 = vmatprep.mubr.f32.mxu0 %v371_v6  ;;  %v393_v10 = vld [vmem:[%s2076_s17 + $0x30] sm:$0xff]  ;;  %s956_s8 = scalar_lea.sflag [#allocation12], %s2061_s23  ;;  %s1686_s0 = scalar_lea.vmem %s2313_s1, 2048 }
  0x9a   : > { %1369 = vmatprep.subr.bf16.mxu0 %v1368_v3  ;;  %v1376_v9 = vpack.c.bf16 %v392_v8, %v391_v7  ;;  %v394_v11 = vld [vmem:[%s2076_s17 + $0x38] sm:$0xff]  ;;  %v395_v13 = vld [vmem:[%s2076_s17 + $0x40] sm:$0xff]  ;;  %v396_v14 = vld [vmem:[%s2076_s17 + $0x48] sm:$0xff]  ;;  %p1687_p13 = scmp.ne.s32.totalorder %s2313_s1, %s1686_s0  ;;  %p2446_p0 = scmp.ne.s32.totalorder %s2434_s29, 0 }
  0x9b   : > { %1371 = vmatpush3.bf16.xpose.msra.mxu0 %v1368_v3  ;;  %v1380_v12 = vpack.c.bf16 %v394_v11, %v393_v10  ;;  %v1384_v15 = vpack.c.bf16 %v396_v14, %v395_v13  ;;  %v397_v16 = vld [vmem:[%s2076_s17 + $0x50] sm:$0xff]  ;;  %v398_v17 = vld [vmem:[%s2076_s17 + $0x58] sm:$0xff]  ;;  %v399_v19 = vld [vmem:[%s2076_s17 + $0x60] sm:$0xff]  ;;  %s1800_s25 = smov [#allocation11]  }
  0x9c   : > { %1373 = vmatprep.subr.bf16.mxu0 %v1372_v5  ;;  %v1388_v18 = vpack.c.bf16 %v398_v17, %v397_v16  ;;  %v400_v20 = vld [vmem:[%s2076_s17 + $0x68] sm:$0xff]  ;;  %v401_v22 = vld [vmem:[%s2076_s17 + $0x70] sm:$0xff]  ;;  %v402_v23 = vld [vmem:[%s2076_s17 + $0x78] sm:$0xff]  ;;  %p1688_p8 = pnand %p1687_p13, %p2446_p0  ;;  %s1690_s15 = sshll.u32 %s1800_s25, 4  ;;  %s1691_s15 = int_to_ptr.vmem [resolvable:$false] %s1690_s15 }
  0x9d   : > { %v1392_v21 = vpack.c.bf16 %v400_v20, %v399_v19  ;;  %v1396_v24 = vpack.c.bf16 %v402_v23, %v401_v22  ;;  %v372_v25 = vld [vmem:[%s2068_s16 + $0x8] sm:$0xff]  ;;  %v373_v26 = vld [vmem:[%s2068_s16 + $0x10] sm:$0xff]  ;;  %v374_v27 = vld [vmem:[%s2068_s16 + $0x18] sm:$0xff]  ;;  %s1692_s9 = scalar_lea.vmem %s1691_s15, 4096  ;;  %p1693_p11 = scmp.lt.s32.totalorder %s2313_s1, %s1691_s15 }
  0x9e   : > { %v375_v28 = vld [vmem:[%s2068_s16 + $0x20] sm:$0xff]  ;;  %v376_v29 = vld [vmem:[%s2068_s16 + $0x28] sm:$0xff]  ;;  %v377_v30 = vld [vmem:[%s2068_s16 + $0x30] sm:$0xff]  ;;  %p1689_p10 = pneg %p1688_p8  ;;  %p1694_p4 = scmp.lt.s32.totalorder %s1692_s9, %s1686_s0 }
  0x9f   : > { %v378_v31 = vld [vmem:[%s2068_s16 + $0x38] sm:$0xff]  ;;  %v379_v32 = vld [vmem:[%s2068_s16 + $0x40] sm:$0xff]  ;;  %v380_v33 = vld [vmem:[%s2068_s16 + $0x48] sm:$0xff] }
  0xa0   : > { %v381_v34 = vld [vmem:[%s2068_s16 + $0x50] sm:$0xff]  ;;  %v382_v35 = vld [vmem:[%s2068_s16 + $0x58] sm:$0xff]  ;;  %v383_v36 = vld [vmem:[%s2068_s16 + $0x60] sm:$0xff]  ;;  %p1695_p3 = por %p1694_p4, %p1693_p11 }
  0xa1   : > { %v384_v37 = vld [vmem:[%s2068_s16 + $0x68] sm:$0xff]  ;;  %v385_v38 = vld [vmem:[%s2068_s16 + $0x70] sm:$0xff]  ;;  %v386_v39 = vld [vmem:[%s2068_s16 + $0x78] sm:$0xff] }
  0xa2   : > { %v419_v40 = vld [vmem:[%s2087_s14] sm:$0xff]  ;;  %v420_v44 = vld [vmem:[%s2087_s14 + $0x8] sm:$0xff]  ;;  %v421_v45 = vld [vmem:[%s2087_s14 + $0x10] sm:$0xff]  ;;  %p1696_p5 = pnand %p1695_p3, %p1689_p10 }
  0xa3   : > { %1375 = vmatpush3.bf16.xpose.msra.mxu0 %v1372_v5  ;;  %vm597_vm0 = vcmp.gt.f32.partialorder %v419_v40, 0.0  ;;  %vm598_vm1 = vcmp.gt.f32.partialorder %v420_v44, 0.0  ;;  %vm599_vm2 = vcmp.gt.f32.partialorder %v421_v45, 0.0  ;;  %v422_v50 = vld [vmem:[%s2087_s14 + $0x18] sm:$0xff]  ;;  %v423_v52 = vld [vmem:[%s2087_s14 + $0x20] sm:$0xff]  ;;  %v424_v59 = vld [vmem:[%s2087_s14 + $0x28] sm:$0xff] }
  0xa4   : > { %1377 = vmatprep.subr.bf16.mxu0 %v1376_v9  ;;  %vm600_vm3 = vcmp.gt.f32.partialorder %v422_v50, 0.0  ;;  %vm601_vm4 = vcmp.gt.f32.partialorder %v423_v52, 0.0  ;;  %v425_v60 = vld [vmem:[%s2087_s14 + $0x30] sm:$0xff]  ;;  %vm602_vm5 = vcmp.gt.f32.partialorder %v424_v59, 0.0  ;;  %v426_v2 = vld [vmem:[%s2087_s14 + $0x38] sm:$0xff]  ;;  %v427_v4 = vld [vmem:[%s2087_s14 + $0x40] sm:$0xff] }
  0xa5   : > { %vm603_vm6 = vcmp.gt.f32.partialorder %v425_v60, 0.0  ;;  %vm604_vm7 = vcmp.gt.f32.partialorder %v426_v2, 0.0  ;;  %vm605_vm8 = vcmp.gt.f32.partialorder %v427_v4, 0.0  ;;  %v428_v11 = vld [vmem:[%s2087_s14 + $0x48] sm:$0xff]  ;;  %v431_v20 = vld [vmem:[%s2087_s14 + $0x60] sm:$0xff]  ;;  %v406_v44 = vld [vmem:[%s2083_s11 + $0x18] sm:$0xff] }
  0xa6   : > { %vm606_vm9 = vcmp.gt.f32.partialorder %v428_v11, 0.0  ;;  %vm609_vm12 = vcmp.gt.f32.partialorder %v431_v20, 0.0  ;;  %v403_v40 = vld [vmem:[%s2083_s11] sm:$0xff]  ;;  %v409_v50 = vld [vmem:[%s2083_s11 + $0x30] sm:$0xff] }
  0xab   : > { %1379 = vmatpush3.bf16.xpose.msra.mxu0 %v1376_v9 }
  0xac   : > { %1381 = vmatprep.subr.bf16.mxu0 %v1380_v12 }
  0xb3   : > { %1383 = vmatpush3.bf16.xpose.msra.mxu0 %v1380_v12  ;;  %v429_v12 = vld [vmem:[%s2087_s14 + $0x50] sm:$0xff] }
  0xb4   : > { %1385 = vmatprep.subr.bf16.mxu0 %v1384_v15  ;;  %vm607_vm10 = vcmp.gt.f32.partialorder %v429_v12, 0.0 }
  0xbb   : > { %1387 = vmatpush3.bf16.xpose.msra.mxu0 %v1384_v15 }
  0xbc   : > { %1389 = vmatprep.subr.bf16.mxu0 %v1388_v18 }
  0xc3   : > { %1391 = vmatpush3.bf16.xpose.msra.mxu0 %v1388_v18  ;;  %v430_v18 = vld [vmem:[%s2087_s14 + $0x58] sm:$0xff] }
  0xc4   : > { %1393 = vmatprep.subr.bf16.mxu0 %v1392_v21  ;;  %vm608_vm11 = vcmp.gt.f32.partialorder %v430_v18, 0.0 }
  0xcb   : > { %1395 = vmatpush3.bf16.xpose.msra.mxu0 %v1392_v21 }
  0xcc   : > { %1397 = vmatprep.subr.bf16.mxu0 %v1396_v24 }
  0xd3   : > { %1399 = vmatpush3.bf16.xpose.msra.mxu0 %v1396_v24 }
  0xda   : > { %1289 = vmatmul.mubr.f32.vlgmr.msra.gmra.mrb[0].mxu0 %v372_v25 }
  0xdb   : > { %1291 = vmatprep.mubr.f32.mxu0 %v373_v26 }
  0xde   : > { %1292 = vmatmul.mubr.f32.gmra.mrb[2].mxu0 %v374_v27  ;;  %v432_v27 = vld [vmem:[%s2087_s14 + $0x68] sm:$0xff] }
  0xdf   : > { %1294 = vmatprep.mubr.f32.mxu0 %v375_v28  ;;  %v433_v28 = vld [vmem:[%s2087_s14 + $0x70] sm:$0xff]  ;;  %vm610_vm13 = vcmp.gt.f32.partialorder %v432_v27, 0.0 }
  0xe0   : > { %vm611_vm14 = vcmp.gt.f32.partialorder %v433_v28, 0.0 }
  0xe2   : > { %1295 = vmatmul.mubr.f32.gmra.mrb[4].mxu0 %v376_v29 }
  0xe3   : > { %1297 = vmatprep.mubr.f32.mxu0 %v377_v30 }
  0xe6   : > { %1298 = vmatmul.mubr.f32.gmra.mrb[6].mxu0 %v378_v31 }
  0xe7   : > { %1300 = vmatprep.mubr.f32.mxu0 %v379_v32 }
  0xea   : > { %1301 = vmatmul.mubr.f32.gmra.mrb[8].mxu0 %v380_v33 }
  0xeb   : > { %1303 = vmatprep.mubr.f32.mxu0 %v381_v34 }
  0xee   : > { %1304 = vmatmul.mubr.f32.gmra.mrb[10].mxu0 %v382_v35  ;;  %v434_v35 = vld [vmem:[%s2087_s14 + $0x78] sm:$0xff] }
  0xef   : > { %1306 = vmatprep.mubr.f32.mxu0 %v383_v36  ;;  %vm612_vm15 = vcmp.gt.f32.partialorder %v434_v35, 0.0 }
  0xf2   : > { %1307 = vmatmul.mubr.f32.gmra.mrb[12].mxu0 %v384_v37 }
  0xf3   : > { %1309 = vmatprep.mubr.f32.mxu0 %v385_v38 }
  0xf6   : > { %1310 = vmatmul.mubr.f32.gmra.mrb[14].mxu0 %v386_v39 }
 0x1ad   : > { %v1290_v41 = vpop.f32.mrb[0].mxu0 }
 0x1ae   : > { %v501_v42 = vpop.f32.mrb[1].mxu0  ;;  %v582_v46 = vmul.f32 0.088388346, %v1290_v41  ;;  %v404_v41 = vld [vmem:[%s2083_s11 + $0x8] sm:$0xff] }
 0x1af   : > { %v581_v43 = vmul.f32 0.088388346, %v501_v42  ;;  %v405_v42 = vld [vmem:[%s2083_s11 + $0x10] sm:$0xff] }
 0x1b0   : > { %v2133_v55 = vsel %vm598_vm1, %v582_v46, -1e+32  ;;  %v1404_v45 = vpack.c.bf16 %v406_v44, %v405_v42  ;;  %v407_v46 = vld [vmem:[%s2083_s11 + $0x20] sm:$0xff]  ;;  %v412_v42 = vld [vmem:[%s2083_s11 + $0x48] sm:$0xff] }
 0x1b1   : > { %v1293_v47 = vpop.f32.mrb[2].mxu0  ;;  %v2128_v48 = vsel %vm597_vm0, %v581_v43, -1e+32  ;;  %v1400_v43 = vpack.c.bf16 %v404_v41, %v403_v40 }
 0x1b2   : > { %629 = vmax.xlane.f32.xlu0 %v2128_v48  ;;  %v511_v49 = vpop.f32.mrb[3].mxu0  ;;  %v584_v53 = vmul.f32 0.088388346, %v1293_v47  ;;  %v408_v47 = vld [vmem:[%s2083_s11 + $0x28] sm:$0xff] }
 0x1b3   : > { %v583_v51 = vmul.f32 0.088388346, %v511_v49  ;;  %1401 = vmatprep.subr.bf16.mxu1 %v1400_v43  ;;  %v1408_v49 = vpack.c.bf16 %v408_v47, %v407_v46 }
 0x1b4   : > { %v2141_v61 = vsel %vm600_vm3, %v584_v53, -1e+32  ;;  %1403 = vmatpush3.bf16.msra.mxu1 %v1400_v43 }
 0x1b5   : > { %v1296_v54 = vpop.f32.mrb[4].mxu0  ;;  %v2135_v56 = vsel %vm599_vm2, %v583_v51, -1e+32  ;;  %1405 = vmatprep.subr.bf16.mxu1 %v1404_v45  ;;  %v410_v51 = vld [vmem:[%s2083_s11 + $0x38] sm:$0xff] }
 0x1b6   : > { %631 = vmax.xlane.f32.xlu0 %v2133_v55  ;;  %633 = vmax.xlane.f32.xlu1 %v2135_v56  ;;  %v521_v57 = vpop.f32.mrb[5].mxu0  ;;  %v586_v62 = vmul.f32 0.088388346, %v1296_v54  ;;  %v1412_v52 = vpack.c.bf16 %v410_v51, %v409_v50  ;;  %v414_v50 = vld [vmem:[%s2083_s11 + $0x58] sm:$0xff] }
 0x1b7   : > { %v585_v58 = vmul.f32 0.088388346, %v521_v57 }
 0x1b8   : > { %v2149_v7 = vsel %vm602_vm5, %v586_v62, -1e+32  ;;  %1407 = vmatpush3.bf16.msra.mxu1 %v1404_v45 }
 0x1b9   : > { %v1299_v63 = vpop.f32.mrb[6].mxu0  ;;  %v2143_v0 = vsel %vm601_vm4, %v585_v58, -1e+32  ;;  %1409 = vmatprep.subr.bf16.mxu1 %v1408_v49 }
 0x1ba   : > { %635 = vmax.xlane.f32.xlu1 %v2141_v61  ;;  %637 = vmax.xlane.f32.xlu0 %v2143_v0  ;;  %v531_v1 = vpop.f32.mrb[7].mxu0  ;;  %v588_v5 = vmul.f32 0.088388346, %v1299_v63 }
 0x1bb   : > { %v587_v3 = vmul.f32 0.088388346, %v531_v1 }
 0x1bc   : > { %v2157_v13 = vsel %vm604_vm7, %v588_v5, -1e+32  ;;  %1411 = vmatpush3.bf16.msra.mxu1 %v1408_v49 }
 0x1bd   : > { %v1302_v6 = vpop.f32.mrb[8].mxu0  ;;  %v2151_v8 = vsel %vm603_vm6, %v587_v3, -1e+32  ;;  %1413 = vmatprep.subr.bf16.mxu1 %v1412_v52 }
 0x1be   : > { %639 = vmax.xlane.f32.xlu1 %v2149_v7  ;;  %641 = vmax.xlane.f32.xlu0 %v2151_v8  ;;  %v541_v9 = vpop.f32.mrb[9].mxu0  ;;  %v590_v14 = vmul.f32 0.088388346, %v1302_v6 }
 0x1bf   : > { %v589_v10 = vmul.f32 0.088388346, %v541_v9 }
 0x1c0   : > { %v2165_v23 = vsel %vm606_vm9, %v590_v14, -1e+32  ;;  %1415 = vmatpush3.bf16.msra.mxu1 %v1412_v52 }
 0x1c1   : > { %v1305_v15 = vpop.f32.mrb[10].mxu0  ;;  %v2159_v16 = vsel %vm605_vm8, %v589_v10, -1e+32 }
 0x1c2   : > { %643 = vmax.xlane.f32.xlu1 %v2157_v13  ;;  %645 = vmax.xlane.f32.xlu0 %v2159_v16  ;;  %v551_v17 = vpop.f32.mrb[11].mxu0  ;;  %v592_v21 = vmul.f32 0.088388346, %v1305_v15 }
 0x1c3   : > { %v591_v19 = vmul.f32 0.088388346, %v551_v17 }
 0x1c4   : > { %v2173_v29 = vsel %vm608_vm11, %v592_v21, -1e+32 }
 0x1c5   : > { %v1308_v22 = vpop.f32.mrb[12].mxu0  ;;  %v2167_v24 = vsel %vm607_vm10, %v591_v19, -1e+32 }
 0x1c6   : > { %647 = vmax.xlane.f32.xlu1 %v2165_v23  ;;  %649 = vmax.xlane.f32.xlu0 %v2167_v24  ;;  %v561_v25 = vpop.f32.mrb[13].mxu0  ;;  %v594_v30 = vmul.f32 0.088388346, %v1308_v22 }
 0x1c7   : > { %v593_v26 = vmul.f32 0.088388346, %v561_v25 }
 0x1c8   : > { %v2180_v37 = vsel %vm610_vm13, %v594_v30, -1e+32 }
 0x1c9   : > { %v1311_v31 = vpop.f32.mrb[14].mxu0  ;;  %v2175_v32 = vsel %vm609_vm12, %v593_v26, -1e+32 }
 0x1ca   : > { %651 = vmax.xlane.f32.xlu1 %v2173_v29  ;;  %653 = vmax.xlane.f32.xlu0 %v2175_v32  ;;  %v571_v33 = vpop.f32.mrb[15].mxu0  ;;  %v596_v36 = vmul.f32 0.088388346, %v1311_v31 }
 0x1cb   : > { %v595_v34 = vmul.f32 0.088388346, %v571_v33 }
 0x1cc   : > { %v2186_v39 = vsel %vm612_vm15, %v596_v36, -1e+32 }
 0x1cd   : > { %v2182_v38 = vsel %vm611_vm14, %v595_v34, -1e+32 }
 0x1ce   : > { %655 = vmax.xlane.f32.xlu1 %v2180_v37  ;;  %657 = vmax.xlane.f32.xlu0 %v2182_v38 }
 0x1d2   : > { %659 = vmax.xlane.f32.xlu1 %v2186_v39 }
 0x23f   : > { %v630_v53 = vpop.xlane.xlu0 %629 }
 0x240   : > { %v661_v54 = vsub.f32 %v2128_v48, %v630_v53 }
 0x242   : > { %v677_v57 = vmul.f32 1.442695, %v661_v54 }
 0x243   : > { %v632_v58 = vpop.xlane.xlu0 %631  ;;  %v634_v59 = vpop.xlane.xlu1 %633 }
 0x244   : > { %1502 = vpow2.f32 %v677_v57  ;;  %v662_v60 = vsub.f32 %v2133_v55, %v632_v58  ;;  %v663_v62 = vsub.f32 %v2135_v56, %v634_v59  ;;  %v416_v57 = vld [vmem:[%s2083_s11 + $0x68] sm:$0xff] }
 0x246   : > { %v679_v63 = vmul.f32 1.442695, %v662_v60  ;;  %v681_v1 = vmul.f32 1.442695, %v663_v62  ;;  %v417_v62 = vld [vmem:[%s2083_s11 + $0x70] sm:$0xff] }
 0x247   : > { %v636_v2 = vpop.xlane.xlu1 %635  ;;  %v638_v3 = vpop.xlane.xlu0 %637 }
 0x248   : > { %1504 = vpow2.f32 %v679_v63  ;;  %v664_v4 = vsub.f32 %v2141_v61, %v636_v2  ;;  %v665_v5 = vsub.f32 %v2143_v0, %v638_v3  ;;  %v418_v63 = vld [vmem:[%s2083_s11 + $0x78] sm:$0xff] }
 0x249   : > { %1506 = vpow2.f32 %v681_v1  ;;  %v1428_v1 = vpack.c.bf16 %v418_v63, %v417_v62 }
 0x24a   : > { %v683_v6 = vmul.f32 1.442695, %v664_v4  ;;  %v685_v48 = vmul.f32 1.442695, %v665_v5 }
 0x24b   : > { %v640_v9 = vpop.xlane.xlu1 %639  ;;  %v642_v10 = vpop.xlane.xlu0 %641 }
 0x24c   : > { %1508 = vpow2.f32 %v683_v6  ;;  %v666_v11 = vsub.f32 %v2149_v7, %v640_v9  ;;  %v667_v55 = vsub.f32 %v2151_v8, %v642_v10 }
 0x24d   : > { %1510 = vpow2.f32 %v685_v48 }
 0x24e   : > { %v2204_v56 = vpop.eup %1502  ;;  %v687_v12 = vmul.f32 1.442695, %v666_v11  ;;  %v689_v14 = vmul.f32 1.442695, %v667_v55 }
 0x24f   : > { %v644_v15 = vpop.xlane.xlu1 %643  ;;  %v646_v17 = vpop.xlane.xlu0 %645  ;;  %709 = vadd.xlane.f32.xlu0 %v2204_v56 }
 0x250   : > { %1512 = vpow2.f32 %v687_v12  ;;  %v668_v61 = vsub.f32 %v2157_v13, %v644_v15  ;;  %v669_v0 = vsub.f32 %v2159_v16, %v646_v17 }
 0x251   : > { %1514 = vpow2.f32 %v689_v14 }
 0x252   : > { %v2209_v18 = vpop.eup %1504  ;;  %v691_v7 = vmul.f32 1.442695, %v668_v61  ;;  %v693_v19 = vmul.f32 1.442695, %v669_v0 }
 0x253   : > { %v2211_v8 = vpop.eup %1506  ;;  %v648_v20 = vpop.xlane.xlu1 %647  ;;  %711 = vadd.xlane.f32.xlu1 %v2209_v18 }
 0x254   : > { %v650_v21 = vpop.xlane.xlu0 %649  ;;  %1516 = vpow2.f32 %v691_v7  ;;  %v670_v22 = vsub.f32 %v2165_v23, %v648_v20  ;;  %713 = vadd.xlane.f32.xlu0 %v2211_v8 }
 0x255   : > { %v671_v25 = vsub.f32 %v2167_v24, %v650_v21  ;;  %1518 = vpow2.f32 %v693_v19 }
 0x256   : > { %v2217_v13 = vpop.eup %1508  ;;  %v695_v16 = vmul.f32 1.442695, %v670_v22 }
 0x257   : > { %v697_v26 = vmul.f32 1.442695, %v671_v25  ;;  %v2219_v27 = vpop.eup %1510  ;;  %v652_v28 = vpop.xlane.xlu1 %651  ;;  %715 = vadd.xlane.f32.xlu1 %v2217_v13 }
 0x258   : > { %v654_v30 = vpop.xlane.xlu0 %653  ;;  %1520 = vpow2.f32 %v695_v16  ;;  %v672_v31 = vsub.f32 %v2173_v29, %v652_v28  ;;  %717 = vadd.xlane.f32.xlu0 %v2219_v27 }
 0x259   : > { %v673_v23 = vsub.f32 %v2175_v32, %v654_v30  ;;  %1522 = vpow2.f32 %v697_v26  ;;  %v411_v32 = vld [vmem:[%s2083_s11 + $0x40] sm:$0xff] }
 0x25a   : > { %v2225_v24 = vpop.eup %1512  ;;  %v699_v33 = vmul.f32 1.442695, %v672_v31  ;;  %v1416_v43 = vpack.c.bf16 %v412_v42, %v411_v32 }
 0x25b   : > { %v701_v34 = vmul.f32 1.442695, %v673_v23  ;;  %v2227_v35 = vpop.eup %1514  ;;  %v656_v36 = vpop.xlane.xlu1 %655  ;;  %719 = vadd.xlane.f32.xlu1 %v2225_v24 }
 0x25c   : > { %v658_v40 = vpop.xlane.xlu0 %657  ;;  %1524 = vpow2.f32 %v699_v33  ;;  %v674_v41 = vsub.f32 %v2180_v37, %v656_v36  ;;  %721 = vadd.xlane.f32.xlu0 %v2227_v35  ;;  %1417 = vmatprep.subr.bf16.mxu1 %v1416_v43 }
 0x25d   : > { %v675_v29 = vsub.f32 %v2182_v38, %v658_v40  ;;  %1526 = vpow2.f32 %v701_v34  ;;  %1419 = vmatpush3.bf16.msra.mxu1 %v1416_v43  ;;  %v413_v38 = vld [vmem:[%s2083_s11 + $0x50] sm:$0xff] }
 0x25e   : > { %v2235_v44 = vpop.eup %1516  ;;  %v703_v45 = vmul.f32 1.442695, %v674_v41  ;;  %v1420_v51 = vpack.c.bf16 %v414_v50, %v413_v38 }
 0x25f   : > { %v705_v46 = vmul.f32 1.442695, %v675_v29  ;;  %v2237_v47 = vpop.eup %1518  ;;  %723 = vadd.xlane.f32.xlu1 %v2235_v44  ;;  %v660_v49 = vpop.xlane.xlu1 %659 }
 0x260   : > { %1528 = vpow2.f32 %v703_v45  ;;  %v676_v37 = vsub.f32 %v2186_v39, %v660_v49  ;;  %725 = vadd.xlane.f32.xlu0 %v2237_v47  ;;  %1421 = vmatprep.subr.bf16.mxu1 %v1420_v51  ;;  %v415_v39 = vld [vmem:[%s2083_s11 + $0x60] sm:$0xff] }
 0x261   : > { %1530 = vpow2.f32 %v705_v46  ;;  %1423 = vmatpush3.bf16.msra.mxu1 %v1420_v51  ;;  %v1424_v58 = vpack.c.bf16 %v416_v57, %v415_v39 }
 0x262   : > { %v2244_v52 = vpop.eup %1520  ;;  %v707_v53 = vmul.f32 1.442695, %v676_v37 }
 0x263   : > { %v2246_v54 = vpop.eup %1522  ;;  %727 = vadd.xlane.f32.xlu1 %v2244_v52  ;;  %1425 = vmatprep.subr.bf16.mxu1 %v1424_v58 }
 0x264   : > { %1532 = vpow2.f32 %v707_v53  ;;  %729 = vadd.xlane.f32.xlu0 %v2246_v54 }
 0x265   : > { %1427 = vmatpush3.bf16.msra.mxu1 %v1424_v58 }
 0x266   : > { %v2252_v59 = vpop.eup %1524  ;;  %1429 = vmatprep.subr.bf16.mxu1 %v1428_v1 }
 0x267   : > { %v2254_v60 = vpop.eup %1526  ;;  %731 = vadd.xlane.f32.xlu1 %v2252_v59 }
 0x268   : > { %733 = vadd.xlane.f32.xlu0 %v2254_v60 }
 0x269   : > { %1431 = vmatpush3.bf16.msra.mxu1 %v1428_v1 }
 0x26a   : > { %v2260_v2 = vpop.eup %1528 }
 0x26b   : > { %v2262_v3 = vpop.eup %1530  ;;  %735 = vadd.xlane.f32.xlu1 %v2260_v2 }
 0x26c   : > { %737 = vadd.xlane.f32.xlu0 %v2262_v3 }
 0x26e   : > { %v2266_v4 = vpop.eup %1532 }
 0x26f   : > { %739 = vadd.xlane.f32.xlu1 %v2266_v4 }
 0x2dc   : > { %v710_v5 = vpop.xlane.xlu0 %709 }
 0x2dd   : > { %1534 = vrcp.f32 %v710_v5 }
 0x2e0   : > { %v712_v6 = vpop.xlane.xlu1 %711 }
 0x2e1   : > { %1536 = vrcp.f32 %v712_v6  ;;  %v714_v48 = vpop.xlane.xlu0 %713 }
 0x2e2   : > { %1538 = vrcp.f32 %v714_v48 }
 0x2e4   : > { %v716_v9 = vpop.xlane.xlu1 %715 }
 0x2e5   : > { %1540 = vrcp.f32 %v716_v9  ;;  %v718_v10 = vpop.xlane.xlu0 %717 }
 0x2e6   : > { %1542 = vrcp.f32 %v718_v10 }
 0x2e7   : > { %v1535_v11 = vpop.eup %1534 }
 0x2e8   : > { %v720_v55 = vpop.xlane.xlu1 %719  ;;  %v742_v12 = vmul.f32 %v1535_v11, %v2204_v56 }
 0x2e9   : > { %1544 = vrcp.f32 %v720_v55  ;;  %v722_v14 = vpop.xlane.xlu0 %721 }
 0x2ea   : > { %1546 = vrcp.f32 %v722_v14  ;;  %773 = vst [vmem:[%s2271_s28] sm:$0xff] %v742_v12  ;;  %1344 = vmatprep.mubr.f32.mxu1 %v742_v12 }
 0x2eb   : > { %v1537_v15 = vpop.eup %1536 }
 0x2ec   : > { %v1539_v17 = vpop.eup %1538  ;;  %v724_v61 = vpop.xlane.xlu1 %723  ;;  %v744_v0 = vmul.f32 %v1537_v15, %v2209_v18 }
 0x2ed   : > { %1548 = vrcp.f32 %v724_v61  ;;  %v726_v7 = vpop.xlane.xlu0 %725  ;;  %v746_v56 = vmul.f32 %v1539_v17, %v2211_v8 }
 0x2ee   : > { %1550 = vrcp.f32 %v726_v7  ;;  %774 = vst [vmem:[%s2271_s28 + $0x8] sm:$0xff] %v744_v0  ;;  %1345 = vmatmul.mubr.f32.vlgmr.msra.gmra.mrb[0].mxu1 %v744_v0 }
 0x2ef   : > { %v1541_v19 = vpop.eup %1540  ;;  %775 = vst [vmem:[%s2271_s28 + $0x10] sm:$0xff] %v746_v56  ;;  %1347 = vmatprep.mubr.f32.mxu1 %v746_v56 }
 0x2f0   : > { %v1543_v20 = vpop.eup %1542  ;;  %v728_v21 = vpop.xlane.xlu1 %727  ;;  %v748_v22 = vmul.f32 %v1541_v19, %v2217_v13 }
 0x2f1   : > { %1552 = vrcp.f32 %v728_v21  ;;  %v730_v25 = vpop.xlane.xlu0 %729  ;;  %v750_v18 = vmul.f32 %v1543_v20, %v2219_v27 }
 0x2f2   : > { %1554 = vrcp.f32 %v730_v25  ;;  %776 = vst [vmem:[%s2271_s28 + $0x18] sm:$0xff] %v748_v22  ;;  %1348 = vmatmul.mubr.f32.gmra.mrb[2].mxu1 %v748_v22 }
 0x2f3   : > { %v1545_v8 = vpop.eup %1544  ;;  %777 = vst [vmem:[%s2271_s28 + $0x20] sm:$0xff] %v750_v18  ;;  %1350 = vmatprep.mubr.f32.mxu1 %v750_v18 }
 0x2f4   : > { %v1547_v16 = vpop.eup %1546  ;;  %v732_v26 = vpop.xlane.xlu1 %731  ;;  %v752_v28 = vmul.f32 %v1545_v8, %v2225_v24 }
 0x2f5   : > { %1556 = vrcp.f32 %v732_v26  ;;  %v734_v30 = vpop.xlane.xlu0 %733  ;;  %v754_v13 = vmul.f32 %v1547_v16, %v2227_v35 }
 0x2f6   : > { %1558 = vrcp.f32 %v734_v30  ;;  %778 = vst [vmem:[%s2271_s28 + $0x28] sm:$0xff] %v752_v28  ;;  %1351 = vmatmul.mubr.f32.gmra.mrb[4].mxu1 %v752_v28 }
 0x2f7   : > { %v1549_v27 = vpop.eup %1548  ;;  %779 = vst [vmem:[%s2271_s28 + $0x30] sm:$0xff] %v754_v13  ;;  %1353 = vmatprep.mubr.f32.mxu1 %v754_v13 }
 0x2f8   : > { %v1551_v31 = vpop.eup %1550  ;;  %v736_v23 = vpop.xlane.xlu1 %735  ;;  %v756_v33 = vmul.f32 %v1549_v27, %v2235_v44 }
 0x2f9   : > { %1560 = vrcp.f32 %v736_v23  ;;  %v738_v34 = vpop.xlane.xlu0 %737  ;;  %v758_v24 = vmul.f32 %v1551_v31, %v2237_v47 }
 0x2fa   : > { %1562 = vrcp.f32 %v738_v34  ;;  %780 = vst [vmem:[%s2271_s28 + $0x38] sm:$0xff] %v756_v33  ;;  %1354 = vmatmul.mubr.f32.gmra.mrb[6].mxu1 %v756_v33 }
 0x2fb   : > { %v1553_v35 = vpop.eup %1552  ;;  %781 = vst [vmem:[%s2271_s28 + $0x40] sm:$0xff] %v758_v24  ;;  %1356 = vmatprep.mubr.f32.mxu1 %v758_v24 }
 0x2fc   : > { %v1555_v36 = vpop.eup %1554  ;;  %v740_v40 = vpop.xlane.xlu1 %739  ;;  %v760_v41 = vmul.f32 %v1553_v35, %v2244_v52 }
 0x2fd   : > { %1564 = vrcp.f32 %v740_v40  ;;  %v762_v29 = vmul.f32 %v1555_v36, %v2246_v54 }
 0x2fe   : > { %782 = vst [vmem:[%s2271_s28 + $0x48] sm:$0xff] %v760_v41  ;;  %1357 = vmatmul.mubr.f32.gmra.mrb[8].mxu1 %v760_v41 }
 0x2ff   : > { %v1557_v32 = vpop.eup %1556  ;;  %783 = vst [vmem:[%s2271_s28 + $0x50] sm:$0xff] %v762_v29  ;;  %1359 = vmatprep.mubr.f32.mxu1 %v762_v29 }
 0x300   : > { %v1559_v42 = vpop.eup %1558  ;;  %v764_v43 = vmul.f32 %v1557_v32, %v2252_v59 }
 0x301   : > { %v766_v44 = vmul.f32 %v1559_v42, %v2254_v60 }
 0x302   : > { %784 = vst [vmem:[%s2271_s28 + $0x58] sm:$0xff] %v764_v43  ;;  %1360 = vmatmul.mubr.f32.gmra.mrb[10].mxu1 %v764_v43 }
 0x303   : > { %v1561_v45 = vpop.eup %1560  ;;  %785 = vst [vmem:[%s2271_s28 + $0x60] sm:$0xff] %v766_v44  ;;  %1362 = vmatprep.mubr.f32.mxu1 %v766_v44 }
 0x304   : > { %v1563_v46 = vpop.eup %1562  ;;  %v768_v47 = vmul.f32 %v1561_v45, %v2260_v2 }
 0x305   : > { %v770_v49 = vmul.f32 %v1563_v46, %v2262_v3 }
 0x306   : > { %786 = vst [vmem:[%s2271_s28 + $0x68] sm:$0xff] %v768_v47  ;;  %1363 = vmatmul.mubr.f32.gmra.mrb[12].mxu1 %v768_v47 }
 0x307   : > { %v1565_v37 = vpop.eup %1564  ;;  %787 = vst [vmem:[%s2271_s28 + $0x70] sm:$0xff] %v770_v49  ;;  %1365 = vmatprep.mubr.f32.mxu1 %v770_v49 }
 0x308   : > { %v772_v38 = vmul.f32 %v1565_v37, %v2266_v4 }
 0x30a   : > { %788 = vst [vmem:[%s2271_s28 + $0x78] sm:$0xff] %v772_v38  ;;  %1366 = vmatmul.mubr.f32.gmra.mrb[14].mxu1 %v772_v38 }
 0x30b   : > { %1699 = shalt.err (!%p1696_p5)
}
 0x30c   : > { %s1700_s16 = scalar_lea.hbm %s2310_s7, 2048  ;;  %s1704_s17 = scalar_lea.hbm %s2421_s5, 4096 }
 0x30d   : > { %p1701_p1 = scmp.ne.s32.totalorder %s2310_s7, %s1700_s16  ;;  %p1705_p12 = scmp.lt.u32.totalorder %s2310_s7, %s2421_s5 }
 0x30e   : > { %p1706_p2 = scmp.lt.u32.totalorder %s1704_s17, %s1700_s16  ;;  %p1708_p13 = scmp.lt.u32.totalorder %s1700_s16, %s2310_s7 }
 0x30f   : > { %p1702_p7 = pnand %p1701_p1, %p2446_p0 }
 0x310   : > { %p1707_p6 = por %p1706_p2, %p1705_p12 }
 0x311   : > { %p1703_p9 = pneg %p1702_p7 }
 0x312   : > { %p1709_p8 = por %p1708_p13, %p1707_p6 }
 0x314   : > { %p1710_p10 = pnand %p1709_p8, %p1703_p9 }
 0x316   : > { %1713 = shalt.err (!%p1710_p10)
}
 0x317   : > { %s1801_s14 = smov 128   ;;  %s1802_s28 = smov 8  }
 0x318   : > { %1441 = dma.vmem_to_hbm [thread:$0]  (%p2446_p0), %s2313_s1, 2048, %s2310_s7, %s956_s8, %s1801_s14, %s1801_s14, %s1802_s28  }
 0x319   : > { %s2343_s12 = scalar_lea.vmem [#allocation10], %s2064_s10  ;;  %s2365_s1 = scalar_lea.hbm %s2420_s4, %s1190_s20 }
 0x31a   : > { %s969_s10 = sshll.u32 %s2343_s12, 4  ;;  %s951_s8 = scalar_lea.sflag [#allocation4], %s2061_s23  ;;  %s2367_s10 = int_to_ptr.vmem [resolvable:$true] %s969_s10 }
 0x31b   : > { %s1714_s0 = scalar_lea.vmem %s2367_s10, 2048  ;;  %s1803_s22 = smov [#allocation10]  }
 0x31c   : > { %p1715_p11 = scmp.ne.s32.totalorder %s2367_s10, %s1714_s0  ;;  %s1718_s25 = sshll.u32 %s1803_s22, 4  ;;  %s1719_s25 = int_to_ptr.vmem [resolvable:$false] %s1718_s25 }
 0x31d   : > { %s1720_s15 = scalar_lea.vmem %s1719_s25, 4096  ;;  %p1721_p5 = scmp.lt.s32.totalorder %s2367_s10, %s1719_s25 }
 0x31e   : > { %p1716_p4 = pnand %p1715_p11, %p2446_p0  ;;  %p1722_p1 = scmp.lt.s32.totalorder %s1720_s15, %s1714_s0 }
 0x320   : > { %p1717_p3 = pneg %p1716_p4  ;;  %p1723_p7 = por %p1722_p1, %p1721_p5 }
 0x322   : > { %p1724_p9 = pnand %p1723_p7, %p1717_p3 }
 0x3c1   : > { %v1346_v50 = vpop.f32.mrb[0].mxu1 }
 0x3c2   : > { %935 = vst [vmem:[%s2343_s12 + $0x8] sm:$0xff] %v1346_v50  ;;  %v855_v51 = vpop.f32.mrb[1].mxu1 }
 0x3c3   : > { %934 = vst [vmem:[%s2343_s12] sm:$0xff] %v855_v51 }
 0x3c5   : > { %v1349_v52 = vpop.f32.mrb[2].mxu1 }
 0x3c6   : > { %937 = vst [vmem:[%s2343_s12 + $0x18] sm:$0xff] %v1349_v52  ;;  %v865_v53 = vpop.f32.mrb[3].mxu1 }
 0x3c7   : > { %936 = vst [vmem:[%s2343_s12 + $0x10] sm:$0xff] %v865_v53 }
 0x3c9   : > { %v1352_v54 = vpop.f32.mrb[4].mxu1 }
 0x3ca   : > { %939 = vst [vmem:[%s2343_s12 + $0x28] sm:$0xff] %v1352_v54  ;;  %v875_v39 = vpop.f32.mrb[5].mxu1 }
 0x3cb   : > { %938 = vst [vmem:[%s2343_s12 + $0x20] sm:$0xff] %v875_v39 }
 0x3cd   : > { %v1355_v57 = vpop.f32.mrb[6].mxu1 }
 0x3ce   : > { %941 = vst [vmem:[%s2343_s12 + $0x38] sm:$0xff] %v1355_v57  ;;  %v885_v58 = vpop.f32.mrb[7].mxu1 }
 0x3cf   : > { %940 = vst [vmem:[%s2343_s12 + $0x30] sm:$0xff] %v885_v58 }
 0x3d1   : > { %v1358_v59 = vpop.f32.mrb[8].mxu1 }
 0x3d2   : > { %943 = vst [vmem:[%s2343_s12 + $0x48] sm:$0xff] %v1358_v59  ;;  %v895_v60 = vpop.f32.mrb[9].mxu1 }
 0x3d3   : > { %942 = vst [vmem:[%s2343_s12 + $0x40] sm:$0xff] %v895_v60 }
 0x3d5   : > { %v1361_v62 = vpop.f32.mrb[10].mxu1 }
 0x3d6   : > { %945 = vst [vmem:[%s2343_s12 + $0x58] sm:$0xff] %v1361_v62  ;;  %v905_v63 = vpop.f32.mrb[11].mxu1 }
 0x3d7   : > { %944 = vst [vmem:[%s2343_s12 + $0x50] sm:$0xff] %v905_v63 }
 0x3d9   : > { %v1364_v1 = vpop.f32.mrb[12].mxu1 }
 0x3da   : > { %947 = vst [vmem:[%s2343_s12 + $0x68] sm:$0xff] %v1364_v1  ;;  %v915_v2 = vpop.f32.mrb[13].mxu1 }
 0x3db   : > { %946 = vst [vmem:[%s2343_s12 + $0x60] sm:$0xff] %v915_v2 }
 0x3dd   : > { %v1367_v3 = vpop.f32.mrb[14].mxu1 }
 0x3de   : > { %949 = vst [vmem:[%s2343_s12 + $0x78] sm:$0xff] %v1367_v3  ;;  %v925_v4 = vpop.f32.mrb[15].mxu1 }
 0x3df   : > { %948 = vst [vmem:[%s2343_s12 + $0x70] sm:$0xff] %v925_v4 }
 0x3e0   : > { %1727 = shalt.err (!%p1724_p9)
}
 0x3e1   : > { %s1728_s20 = scalar_lea.hbm %s2365_s1, 2048  ;;  %s1732_s6 = scalar_lea.hbm %s2420_s4, 4096 }
 0x3e2   : > { %p1729_p12 = scmp.ne.s32.totalorder %s2365_s1, %s1728_s20  ;;  %p1733_p13 = scmp.lt.u32.totalorder %s2365_s1, %s2420_s4 }
 0x3e3   : > { %p1734_p8 = scmp.lt.u32.totalorder %s1732_s6, %s1728_s20  ;;  %p1736_p11 = scmp.lt.u32.totalorder %s1728_s20, %s2365_s1 }
 0x3e4   : > { %p1730_p2 = pnand %p1729_p12, %p2446_p0 }
 0x3e5   : > { %p1735_p10 = por %p1734_p8, %p1733_p13 }
 0x3e6   : > { %p1731_p6 = pneg %p1730_p2 }
 0x3e7   : > { %p1737_p4 = por %p1736_p11, %p1735_p10 }
 0x3e9   : > { %p1738_p3 = pnand %p1737_p4, %p1731_p6 }
 0x3eb   : > { %1741 = shalt.err (!%p1738_p3)
}
 0x3ec   : > { %1440 = dma.vmem_to_hbm [thread:$0]  (%p2446_p0), %s2367_s10, 2048, %s2365_s1, %s951_s8, %s1801_s14, %s1801_s14, %s1802_s28  }
 0x3ed PF: > { %s1000_s11 = sand.u32 1, %s1780_s18   ;;  %p2447_p5 = scmp.ne.s32.totalorder %s2435_s30, 0 }
 0x3ee   : > { %p2448_p1 = scmp.ge.s32.totalorder %s1792_s21, 2  ;;  %s1001_s13 = scalar_lea.sflag [#allocation4], %s1000_s11 }
 0x3f0   : > { %p1458_p7 = pnand %p2448_p1, %p2447_p5 }
 0x3f2   : > { %1771 = dma.done.wait (!%p1458_p7), %s1001_s13, 2048  }
 0x3f3   : > { %1773 = vsyncadd (!%p1458_p7), %s1001_s13, 4294965248  ;;  %s1010_s29 = scalar_lea.sflag [#allocation12], %s1000_s11 }
 0x3f4   : > { %1775 = dma.done.wait (!%p1458_p7), %s1010_s29, 2048  }
 0x3f5   : > { %1777 = vsyncadd (!%p1458_p7), %s1010_s29, 4294965248  ;;  %s2449_s23 = sld [smem:[#allocation18_spill]]  ;;  %s2450_s20 = sld [smem:[#allocation19_spill]] }
 0x3f6   : > { %p28_p0 = scmp.ge.s32.totalorder %s1859_s24, 4   ;;  %s2451_s18 = smov %s1784_s19 }
 0x3f7   : > { %s2453_s21 = smov %s1859_s24 }
 0x3f8   :  { %30 = sbr.rel (!%p28_p0) target bundleno = 14 (0xe), region = 135 }
 0x3fb   : > { %s2452_s19 = smov %s2449_s23 }
 0x3ff   :  { %1015 = vsyncpa [#allocation3], 1 }
 0x400   :  { %1017 = vsyncpa [#allocation3 + $0x1], 1 }
 0x401   :  { %1018 = vsyncpa [#allocation6], 1 }
 0x402   :  { %1020 = vsyncpa [#allocation6 + $0x1], 1 }
 0x403   :  { %1021 = vsyncpa [#allocation9], 1 }
 0x404   :  { %1023 = vsyncpa [#allocation9 + $0x1], 1 }
 0x405   :  { %1024 = vsyncpa [#allocation4], 1 }
 0x406   :  { %1026 = vsyncpa [#allocation4 + $0x1], 1 }
 0x407   :  { %1027 = vsyncpa [#allocation12], 1 }
 0x408   :  { %1029 = vsyncpa [#allocation12 + $0x1], 1 }

</bundles_post_ra>
